<compile_context>
chip_gen: v7x
topology: tpu7x:2x2x1
jax: 0.10.0
libtpu: 0.0.40
codegen_flags: <defaults>
</compile_context>

<pallas_src>
import jax
import jax.numpy as jnp
from jax.experimental import pallas as pl
from jax.experimental.pallas import tpu as pltpu


def linear_sigmoid_kernel(x_ref, w_ref, b_ref, o_ref):
    # x_ref: (TM, H) f32 VMEM tile of rows
    # w_ref: (1, H)  f32 VMEM, pinned across grid steps
    # b_ref: (1, 1)  f32 SMEM scalar
    # o_ref: (1, TM) f32 VMEM, lane-dense output tile
    acc = jax.lax.dot_general(
        w_ref[...], x_ref[...],
        dimension_numbers=(((1,), (1,)), ((), ())),   # contract H with H -> (1, TM)
        preferred_element_type=jnp.float32,
        precision=jax.lax.Precision.HIGHEST,
    )
    o_ref[...] = jax.nn.sigmoid(acc + b_ref[0, 0])


def classifier_forward(x, w2, b2, *, tm_max=512):
    """x: (L, N, H) f32; w2: (1, H); b2: (1,). Returns (L, N, 1) f32."""
    L, N, H = x.shape
    M = L * N
    x2d = x.reshape(M, H)

    # Lane-align M (output tile lane dim must be a multiple of 128) and pick a
    # row-tile TM that divides the padded extent.
    m_lane = ((M + 127) // 128) * 128
    tm = min(tm_max, m_lane)
    m_pad = pl.cdiv(m_lane, tm) * tm
    if m_pad != M:
        x2d = jnp.pad(x2d, ((0, m_pad - M), (0, 0)))

    b2_smem = b2.reshape(1, 1).astype(jnp.float32)

    out = pl.pallas_call(
        linear_sigmoid_kernel,
        out_shape=jax.ShapeDtypeStruct((1, m_pad), jnp.float32),
        grid=(m_pad // tm,),
        in_specs=[
            pl.BlockSpec((tm, H), lambda i: (i, 0)),                 # x rows, streamed
            pl.BlockSpec((1, H), lambda i: (0, 0)),                  # w2 pinned
            pl.BlockSpec((1, 1), lambda i: (0, 0),
                         memory_space=pltpu.MemorySpace.SMEM),       # b2 scalar
        ],
        out_specs=pl.BlockSpec((1, tm), lambda i: (0, i)),           # lane-dense out
        compiler_params=pltpu.CompilerParams(
            dimension_semantics=("parallel",),                       # 2-TC sharding on v7x
        ),
    )(x2d, w2, b2_smem)

    # Drop padded rows and restore (L, N, 1).
    return out[0, :M].reshape(L, N, 1)


if __name__ == "__main__":
    # Small, TPU-friendly shapes implied by the module:
    #   max_length (input & hidden size) = 128, seq_len = 8, batch = 4.
    L, N, H = 8, 4, 128

    key = jax.random.PRNGKey(0)
    kx, kw, kb = jax.random.split(key, 3)

    x = jax.random.normal(kx, (L, N, H), dtype=jnp.float32)
    # Deterministic init of linear2 (nn.Linear(max_length, 1)): W2 (1, H), b2 (1,)
    w2 = jax.random.normal(kw, (1, H), dtype=jnp.float32) / jnp.sqrt(jnp.float32(H))
    b2 = 0.1 * jax.random.normal(kb, (1,), dtype=jnp.float32)

    out = classifier_forward(x, w2, b2)
    out = jax.block_until_ready(out)

    # Pure-JAX reference of the PyTorch forward's observable semantics.
    ref = jax.nn.sigmoid(jnp.einsum("lnh,oh->lno", x, w2) + b2)

    assert out.shape == (L, N, 1), out.shape
    assert jnp.allclose(out, ref, atol=1e-5, rtol=1e-5), float(jnp.abs(out - ref).max())

    print("KERNEL_OK")
</pallas_src>

<mosaic_0001>
module attributes {stable_mosaic.version = 11 : i64} {
  func.func @linear_sigmoid_kernel(%arg0: i32, %arg1: memref<128x128xf32, #tpu.memory_space<vmem>>, %arg2: memref<1x128xf32, #tpu.memory_space<vmem>>, %arg3: memref<1x1xf32, #tpu.memory_space<smem>>, %arg4: memref<1x128xf32, #tpu.memory_space<vmem>>) attributes {dimension_semantics = [#tpu.dimension_semantics<parallel>], iteration_bounds = array<i64: 1>, scalar_prefetch = 0 : i64, scratch_operands = 0 : i64, tpu.core_type = #tpu.core_type<tc>, window_params = [{transform_indices = @transform_0, window_bounds = array<i64: 128, 128>}, {pipeline_mode = #tpu.pipeline_mode<synchronous>, transform_indices = @transform_1, window_bounds = array<i64: 1, 128>}, {transform_indices = @transform_2, window_bounds = array<i64: 1, 1>}, {transform_indices = @transform_3, window_bounds = array<i64: 1, 128>}]} {
    %c0 = arith.constant 0 : index
    %c0_0 = arith.constant 0 : index
    %0 = vector.load %arg2[%c0, %c0_0] : memref<1x128xf32, #tpu.memory_space<vmem>>, vector<1x128xf32>
    %c0_1 = arith.constant 0 : index
    %c0_2 = arith.constant 0 : index
    %1 = vector.load %arg1[%c0_1, %c0_2] : memref<128x128xf32, #tpu.memory_space<vmem>>, vector<128x128xf32>
    %cst = arith.constant dense<0.000000e+00> : vector<1x128xf32>
    %2 = tpu.matmul %0, %1, %cst {dimension_numbers = #tpu.dot_dimension_numbers<[1], [1], [0], [0], [0, 0, 1, 0], [], []>, precision = #tpu.contract_precision<fp32>} : vector<1x128xf32>, vector<128x128xf32>, vector<1x128xf32> -> vector<1x128xf32>
    %c0_3 = arith.constant 0 : index
    %c0_4 = arith.constant 0 : index
    %3 = memref.load %arg3[%c0_3, %c0_4] : memref<1x1xf32, #tpu.memory_space<smem>>
    %4 = vector.broadcast %3 : f32 to vector<1x128xf32>
    %5 = arith.addf %2, %4 : vector<1x128xf32>
    %6 = arith.negf %5 : vector<1x128xf32>
    %7 = math.exp %6 : vector<1x128xf32>
    %cst_5 = arith.constant 1.000000e+00 : f32
    %8 = vector.broadcast %cst_5 : f32 to vector<1x128xf32>
    %9 = arith.addf %8, %7 : vector<1x128xf32>
    %10 = arith.divf %8, %9 : vector<1x128xf32>
    %c0_6 = arith.constant 0 : index
    %c0_7 = arith.constant 0 : index
    %11 = vector.load %arg4[%c0_6, %c0_7] : memref<1x128xf32, #tpu.memory_space<vmem>>, vector<1x128xf32>
    tpu.vector_store %arg4[%c0_6, %c0_7], %10 {strides = array<i32>} : memref<1x128xf32, #tpu.memory_space<vmem>>, vector<1x128xf32>,
    return
  }
  func.func @transform_0(%arg0: i32) -> (i32, i32) {
    %c0_i32 = arith.constant 0 : i32
    %c0_i32_0 = arith.constant 0 : i32
    return %arg0, %c0_i32 : i32, i32
  }
  func.func @transform_1(%arg0: i32) -> (i32, i32) {
    %c0_i32 = arith.constant 0 : i32
    %c0_i32_0 = arith.constant 0 : i32
    %c0_i32_1 = arith.constant 0 : i32
    return %c0_i32, %c0_i32_0 : i32, i32
  }
  func.func @transform_2(%arg0: i32) -> (i32, i32) {
    %c0_i32 = arith.constant 0 : i32
    %c0_i32_0 = arith.constant 0 : i32
    %c0_i32_1 = arith.constant 0 : i32
    return %c0_i32, %c0_i32_0 : i32, i32
  }
  func.func @transform_3(%arg0: i32) -> (i32, i32) {
    %c0_i32 = arith.constant 0 : i32
    %c0_i32_0 = arith.constant 0 : i32
    return %c0_i32, %arg0 : i32, i32
  }
}

</mosaic_0001>

<bundles_post_ra>
// kernel: tpu_custom_call.1
= control target key start
LH: loop header
LB: loop body
LE: loop exit
PB: predicated region body
PF: predicated region fallthrough
CT: control target
= control target key end

     0   :  { %9 = vsyncpa [#allocation4], 0  ;;  %s1510_s0 = inlined_call_operand.hbm [shape: f32[128,128], index: 0, kind: input, shape index: {}]   ;;  %s1511_s1 = inlined_call_operand.vmem [shape: f32[1,128], index: 1, kind: input, shape index: {}]   ;;  %s1512_s2 = inlined_call_operand.<no memory space> [shape: f32[1,1], index: 2, kind: input, shape index: {}]   ;;  %s1513_s3 = inlined_call_operand.hbm [shape: f32[1,128], index: 3, kind: output, shape index: {}]  }
   0x1   :  { %10 = vsyncpa [#allocation5], 0  ;;  %s1238_s12 = smov [#allocation3]   ;;  %s1190_s16 = scalar_lea.hbm %s1510_s0, 2048 }
   0x2   :  { %s16_s13 = sshll.u32 %s1238_s12, 4  ;;  %p1191_p0 = scmp.ne.s32.totalorder %s1510_s0, %s1190_s16  ;;  %s17_s13 = int_to_ptr.vmem [resolvable:$true] %s16_s13 }
   0x3   :  { %p1194_p1 = scmp.lt.u32.totalorder %s1190_s16, %s1510_s0 }
   0x5   :  { %p1196_p2 = pnand %p1194_p1, %p1191_p0 }
   0x7   :  { %1199 = shalt.err (!%p1196_p2)
}
   0x8   :  { %s1200_s21 = scalar_lea.vmem %s17_s13, 2048  ;;  %p1205_p4 = scmp.lt.s32.totalorder %s17_s13, %s17_s13 }
   0x9   :  { %p1201_p3 = scmp.ne.s32.totalorder %s17_s13, %s1200_s21  ;;  %p1206_p5 = scmp.lt.s32.totalorder %s1200_s21, %s1200_s21 }
   0xb   :  { %p1207_p6 = por %p1206_p5, %p1205_p4 }
   0xd   :  { %p1208_p7 = pnand %p1207_p6, %p1201_p3 }
   0xf   :  { %1211 = shalt.err (!%p1208_p7)
}
  0x10   :  { %s1239_s22 = smov 128   ;;  %s1240_s23 = smov 8  }
  0x11   :  { %22 = dma.hbm_to_vmem [thread:$0]  %s1510_s0, 2048, %s17_s13, [#allocation4], %s1239_s22, %s1239_s22, %s1240_s23  }
  0x12   :  { %1234 = dma.done.wait [#allocation4], 2048  }
  0x13   :  { %1235 = vsyncadd [#allocation4], 4294965248  ;;  %v1241_v0 = vmov 0.0|0.0   ;;  %vm1242_vm0 = vmmov 0   ;;  %v1243_v1 = vmov 0.0   ;;  %v31_v2 = vld [vmem:[#allocation3] sm:$0xff] }
  0x14   :  { %1025 = vmatprep.subr.bf16.mxu1 %v1241_v0  ;;  %1097 = vmatprep.subr.bf16.mxu0 %v1241_v0  ;;  %v32_v3 = vld [vmem:[#allocation3 + $0x8] sm:$0xff]  ;;  %v50_v4 = vand.u32 4294901760, %v31_v2  ;;  %v33_v6 = vld [vmem:[#allocation3 + $0x10] sm:$0xff]  ;;  %v34_v7 = vld [vmem:[#allocation3 + $0x18] sm:$0xff]  ;;  %s1244_s28 = smov [#allocation6]  }
  0x15   :  { %847 = vmatprep.mubr.msk.f32.mxu1 %vm1242_vm0, %v1243_v1  ;;  %952 = vmatprep.mubr.msk.f32.mxu0 %vm1242_vm0, %v1243_v1  ;;  %v53_v5 = vand.u32 4294901760, %v32_v3  ;;  %v56_v9 = vand.u32 4294901760, %v33_v6  ;;  %v59_v10 = vand.u32 4294901760, %v34_v7  ;;  %v35_v12 = vld [vmem:[#allocation3 + $0x20] sm:$0xff]  ;;  %v36_v13 = vld [vmem:[#allocation3 + $0x28] sm:$0xff]  ;;  %v37_v17 = vld [vmem:[#allocation3 + $0x30] sm:$0xff] }
  0x16   :  { %v62_v14 = vand.u32 4294901760, %v35_v12  ;;  %v65_v15 = vand.u32 4294901760, %v36_v13  ;;  %v38_v18 = vld [vmem:[#allocation3 + $0x38] sm:$0xff]  ;;  %v68_v19 = vand.u32 4294901760, %v37_v17  ;;  %v1301_v21 = vsub.f32 %v31_v2, %v50_v4  ;;  %v39_v23 = vld [vmem:[#allocation3 + $0x40] sm:$0xff]  ;;  %v40_v24 = vld [vmem:[#allocation3 + $0x48] sm:$0xff] }
  0x17   :  { %v1283_v8 = vpack.c.bf16 %v53_v5, %v50_v4  ;;  %v1289_v11 = vpack.c.bf16 %v59_v10, %v56_v9  ;;  %v71_v20 = vand.u32 4294901760, %v38_v18  ;;  %v1303_v22 = vsub.f32 %v32_v3, %v53_v5  ;;  %v41_v41 = vld [vmem:[#allocation3 + $0x50] sm:$0xff]  ;;  %v42_v42 = vld [vmem:[#allocation3 + $0x58] sm:$0xff]  ;;  %v43_v49 = vld [vmem:[#allocation3 + $0x60] sm:$0xff]  ;;  %s703_s29 = sshll.u32 %s1244_s28, 4  ;;  %s704_s29 = int_to_ptr.vmem [resolvable:$true] %s703_s29 }
  0x18   :  { %v1295_v16 = vpack.c.bf16 %v65_v15, %v62_v14  ;;  %v1305_v25 = vsub.f32 %v33_v6, %v56_v9  ;;  %v1307_v26 = vsub.f32 %v34_v7, %v59_v10  ;;  %v1309_v27 = vsub.f32 %v35_v12, %v62_v14  ;;  %v44_v50 = vld [vmem:[#allocation3 + $0x68] sm:$0xff]  ;;  %v30_v56 = vld [vmem:[%s1511_s1] sm:$0x1]  ;;  %v45_v58 = vld [vmem:[#allocation3 + $0x70] sm:$0xff]  ;;  %s1212_s30 = scalar_lea.vmem %s704_s29, 16  ;;  %s1216_s4 = scalar_lea.vmem %s704_s29, 32 }
  0x19   :  { %1027 = vmatpush3.bf16.xpose.msra.mxu1 %v1283_v8  ;;  %1099 = vmatpush3.bf16.xpose.msra.mxu0 %v1283_v8  ;;  %v1311_v28 = vsub.f32 %v36_v13, %v65_v15  ;;  %v1313_v29 = vpack.c.bf16 %v71_v20, %v68_v19  ;;  %v1074_v30 = vpack.c.bf16 %v1303_v22, %v1301_v21  ;;  %v74_v33 = vand.u32 4294901760, %v39_v23  ;;  %v46_v59 = vld [vmem:[#allocation3 + $0x78] sm:$0xff]  ;;  %p1213_p8 = scmp.ne.s32.totalorder %s704_s29, %s1212_s30  ;;  %p1217_p9 = scmp.lt.s32.totalorder %s704_s29, %s704_s29 }
  0x1a   :  { %1028 = vmatprep.subr.bf16.mxu1 %v1241_v0  ;;  %1100 = vmatprep.subr.bf16.mxu0 %v1241_v0  ;;  %v1317_v31 = vsub.f32 %v37_v17, %v68_v19  ;;  %v1319_v32 = vsub.f32 %v38_v18, %v71_v20  ;;  %v77_v34 = vand.u32 4294901760, %v40_v24  ;;  %v1077_v35 = vpack.c.bf16 %v1307_v26, %v1305_v25  ;;  %p1218_p10 = scmp.lt.s32.totalorder %s1216_s4, %s1212_s30 }
  0x1b   :  { %v1323_v36 = vsub.f32 %v39_v23, %v74_v33  ;;  %v1080_v38 = vpack.c.bf16 %v1311_v28, %v1309_v27  ;;  %v80_v44 = vand.u32 4294901760, %v41_v41  ;;  %v83_v45 = vand.u32 4294901760, %v42_v42 }
  0x1c   :  { %v1325_v37 = vsub.f32 %v40_v24, %v77_v34  ;;  %v1083_v39 = vpack.c.bf16 %v1319_v32, %v1317_v31  ;;  %v1337_v43 = vpack.c.bf16 %v77_v34, %v74_v33  ;;  %v86_v52 = vand.u32 4294901760, %v43_v49  ;;  %p1219_p11 = por %p1218_p10, %p1217_p9 }
  0x1d   :  { %v1339_v46 = vsub.f32 %v41_v41, %v80_v44  ;;  %v1341_v47 = vsub.f32 %v42_v42, %v83_v45  ;;  %v1349_v51 = vpack.c.bf16 %v83_v45, %v80_v44  ;;  %v89_v53 = vand.u32 4294901760, %v44_v50 }
  0x1e   :  { %v1086_v40 = vpack.c.bf16 %v1325_v37, %v1323_v36  ;;  %v1351_v54 = vsub.f32 %v43_v49, %v86_v52  ;;  %v1364_v60 = vand.u32 4294901760, %v30_v56  ;;  %v92_v62 = vand.u32 4294901760, %v45_v58  ;;  %p1220_p12 = pnand %p1219_p11, %p1213_p8 }
  0x1f   :  { %v1089_v48 = vpack.c.bf16 %v1341_v47, %v1339_v46  ;;  %v1353_v55 = vsub.f32 %v44_v50, %v89_v53  ;;  %v1366_v61 = vpack.c.bf16 %v89_v53, %v86_v52  ;;  %v95_v63 = vand.u32 4294901760, %v46_v59 }
  0x20   :  { %v1368_v2 = vsub.f32 %v45_v58, %v92_v62  ;;  %v1373_v4 = vsub.f32 %v30_v56, %v1364_v60  ;;  %v143_v5 = vand.u32 4294901760, %v1301_v21  ;;  %v150_v6 = vand.u32 4294901760, %v1303_v22 }
  0x21   :  { %1030 = vmatpush3.bf16.xpose.msra.mxu1 %v1289_v11  ;;  %1102 = vmatpush3.bf16.xpose.msra.mxu0 %v1289_v11  ;;  %v1092_v57 = vpack.c.bf16 %v1353_v55, %v1351_v54  ;;  %v1370_v3 = vsub.f32 %v46_v59, %v95_v63  ;;  %v1384_v10 = vpack.c.bf16 %v95_v63, %v92_v62  ;;  %v157_v18 = vand.u32 4294901760, %v1305_v25 }
  0x22   :  { %1031 = vmatprep.subr.bf16.mxu1 %v1241_v0  ;;  %1103 = vmatprep.subr.bf16.mxu0 %v1241_v0  ;;  %v132_v9 = vand.u32 4294901760, %v1373_v4  ;;  %v144_v12 = vsub.f32 %v1301_v21, %v143_v5  ;;  %v151_v13 = vsub.f32 %v1303_v22, %v150_v6  ;;  %v164_v19 = vand.u32 4294901760, %v1307_v26 }
  0x23   :  { %v1095_v7 = vpack.c.bf16 %v1370_v3, %v1368_v2  ;;  %v1122_v24 = vpack.c.bf16 %v150_v6, %v143_v5  ;;  %v158_v33 = vsub.f32 %v1305_v25, %v157_v18  ;;  %v171_v44 = vand.u32 4294901760, %v1309_v27 }
  0x24   :  { %v133_v14 = vsub.f32 %v1373_v4, %v132_v9  ;;  %v145_v15 = vand.u32 4294901760, %v144_v12  ;;  %v152_v17 = vand.u32 4294901760, %v151_v13  ;;  %v165_v34 = vsub.f32 %v1307_v26, %v164_v19 }
  0x25   :  { %v159_v41 = vand.u32 4294901760, %v158_v33  ;;  %v178_v45 = vand.u32 4294901760, %v1311_v28  ;;  %v1125_v50 = vpack.c.bf16 %v164_v19, %v157_v18  ;;  %v172_v52 = vsub.f32 %v1309_v27, %v171_v44 }
  0x26   :  { %v134_v20 = vand.u32 4294901760, %v133_v14  ;;  %v1050_v23 = vpack.c.bf16 %v152_v17, %v145_v15  ;;  %v166_v42 = vand.u32 4294901760, %v165_v34  ;;  %v185_v59 = vand.u32 4294901760, %v1317_v31 }
  0x27   :  { %v179_v53 = vsub.f32 %v1311_v28, %v178_v45  ;;  %v173_v56 = vand.u32 4294901760, %v172_v52  ;;  %v192_v62 = vand.u32 4294901760, %v1319_v32  ;;  %v1128_v5 = vpack.c.bf16 %v178_v45, %v171_v44 }
  0x28   :  { %v1053_v49 = vpack.c.bf16 %v166_v42, %v159_v41  ;;  %v186_v6 = vsub.f32 %v1317_v31, %v185_v59  ;;  %v199_v14 = vand.u32 4294901760, %v1323_v36  ;;  %v206_v15 = vand.u32 4294901760, %v1325_v37 }
  0x29   :  { %1033 = vmatpush3.bf16.xpose.msra.mxu1 %v1295_v16  ;;  %1105 = vmatpush3.bf16.xpose.msra.mxu0 %v1295_v16  ;;  %v180_v58 = vand.u32 4294901760, %v179_v53  ;;  %v1131_v18 = vpack.c.bf16 %v192_v62, %v185_v59  ;;  %v213_v33 = vand.u32 4294901760, %v1339_v46  ;;  %v220_v34 = vand.u32 4294901760, %v1341_v47 }
  0x2a   :  { %1034 = vmatprep.subr.bf16.mxu1 %v1241_v0  ;;  %1106 = vmatprep.subr.bf16.mxu0 %v1241_v0  ;;  %v187_v12 = vand.u32 4294901760, %v186_v6  ;;  %v200_v19 = vsub.f32 %v1323_v36, %v199_v14  ;;  %v1134_v42 = vpack.c.bf16 %v206_v15, %v199_v14  ;;  %v227_v52 = vand.u32 4294901760, %v1351_v54 }
  0x2b   :  { %v1056_v63 = vpack.c.bf16 %v180_v58, %v173_v56  ;;  %v214_v44 = vsub.f32 %v1339_v46, %v213_v33  ;;  %v221_v45 = vsub.f32 %v1341_v47, %v220_v34  ;;  %v234_v53 = vand.u32 4294901760, %v1353_v55 }
  0x2c   :  { %v1137_v58 = vpack.c.bf16 %v220_v34, %v213_v33  ;;  %v228_v59 = vsub.f32 %v1351_v54, %v227_v52  ;;  %v241_v6 = vand.u32 4294901760, %v1368_v2 }
  0x2e   :  { %v242_v14 = vsub.f32 %v1368_v2, %v241_v6 }
  0x31   :  { %1036 = vmatpush3.bf16.xpose.msra.mxu1 %v1313_v29  ;;  %1108 = vmatpush3.bf16.xpose.msra.mxu0 %v1313_v29 }
  0x32   :  { %1037 = vmatprep.subr.bf16.mxu1 %v1241_v0  ;;  %1109 = vmatprep.subr.bf16.mxu0 %v1241_v0 }
  0x39   :  { %1039 = vmatpush3.bf16.xpose.msra.mxu1 %v1337_v43  ;;  %1111 = vmatpush3.bf16.xpose.msra.mxu0 %v1337_v43 }
  0x3a   :  { %1040 = vmatprep.subr.bf16.mxu1 %v1241_v0  ;;  %1112 = vmatprep.subr.bf16.mxu0 %v1241_v0 }
  0x41   :  { %1042 = vmatpush3.bf16.xpose.msra.mxu1 %v1349_v51  ;;  %1114 = vmatpush3.bf16.xpose.msra.mxu0 %v1349_v51 }
  0x42   :  { %1043 = vmatprep.subr.bf16.mxu1 %v1241_v0  ;;  %1115 = vmatprep.subr.bf16.mxu0 %v1241_v0 }
  0x49   :  { %1045 = vmatpush3.bf16.xpose.msra.mxu1 %v1366_v61  ;;  %1117 = vmatpush3.bf16.xpose.msra.mxu0 %v1366_v61 }
  0x4a   :  { %1046 = vmatprep.subr.bf16.mxu1 %v1241_v0  ;;  %1118 = vmatprep.subr.bf16.mxu0 %v1241_v0 }
  0x51   :  { %1048 = vmatpush3.bf16.xpose.msra.mxu1 %v1384_v10  ;;  %1120 = vmatpush3.bf16.xpose.msra.mxu0 %v1384_v10 }
  0x52   :  { %1049 = vmatprep.subr.bf16.mxu1 %v1241_v0  ;;  %1121 = vmatprep.subr.bf16.mxu0 %v1241_v0 }
  0x58   :  { %848 = vmatmul.mubr.f32.vlgmr.msra.gmra.mrb[0].mxu1 %v134_v20  ;;  %953 = vmatmul.mubr.f32.vlgmr.msra.gmra.mrb[0].mxu0 %v132_v9  ;;  %v193_v9 = vsub.f32 %v1319_v32, %v192_v62  ;;  %v207_v20 = vsub.f32 %v1325_v37, %v206_v15  ;;  %v235_v62 = vsub.f32 %v1353_v55, %v234_v53 }
  0x59   :  { %1051 = vmatpush3.bf16.xpose.msra.mxu1 %v1050_v23  ;;  %1123 = vmatpush3.bf16.xpose.msra.mxu0 %v1122_v24  ;;  %v201_v23 = vand.u32 4294901760, %v200_v19 }
  0x5a   :  { %1052 = vmatprep.subr.bf16.mxu1 %v1241_v0  ;;  %1124 = vmatprep.subr.bf16.mxu0 %v1241_v0  ;;  %v194_v13 = vand.u32 4294901760, %v193_v9  ;;  %v208_v24 = vand.u32 4294901760, %v207_v20  ;;  %v248_v9 = vand.u32 4294901760, %v1370_v3 }
  0x5b   :  { %882 = vmatprep.mubr.msk.f32.mxu1 %vm1242_vm0, %v1243_v1  ;;  %987 = vmatprep.mubr.msk.f32.mxu0 %vm1242_vm0, %v1243_v1 }
  0x5c   :  { %v1059_v17 = vpack.c.bf16 %v194_v13, %v187_v12  ;;  %v1062_v41 = vpack.c.bf16 %v208_v24, %v201_v23  ;;  %v1140_v13 = vpack.c.bf16 %v234_v53, %v227_v52  ;;  %v249_v15 = vsub.f32 %v1370_v3, %v248_v9 }
  0x5d   :  { %v1143_v20 = vpack.c.bf16 %v248_v9, %v241_v6 }
  0x61   :  { %1054 = vmatpush3.bf16.xpose.msra.mxu1 %v1053_v49  ;;  %1126 = vmatpush3.bf16.xpose.msra.mxu0 %v1125_v50  ;;  %v215_v49 = vand.u32 4294901760, %v214_v44  ;;  %v222_v50 = vand.u32 4294901760, %v221_v45 }
  0x62   :  { %1055 = vmatprep.subr.bf16.mxu1 %v1241_v0  ;;  %1127 = vmatprep.subr.bf16.mxu0 %v1241_v0 }
  0x63   :  { %v1065_v56 = vpack.c.bf16 %v222_v50, %v215_v49 }
  0x69   :  { %1057 = vmatpush3.bf16.xpose.msra.mxu1 %v1056_v63  ;;  %1129 = vmatpush3.bf16.xpose.msra.mxu0 %v1128_v5  ;;  %v229_v63 = vand.u32 4294901760, %v228_v59  ;;  %v236_v5 = vand.u32 4294901760, %v235_v62 }
  0x6a   :  { %1058 = vmatprep.subr.bf16.mxu1 %v1241_v0  ;;  %1130 = vmatprep.subr.bf16.mxu0 %v1241_v0 }
  0x6b   :  { %v1068_v12 = vpack.c.bf16 %v236_v5, %v229_v63 }
  0x71   :  { %1060 = vmatpush3.bf16.xpose.msra.mxu1 %v1059_v17  ;;  %1132 = vmatpush3.bf16.xpose.msra.mxu0 %v1131_v18  ;;  %v243_v17 = vand.u32 4294901760, %v242_v14  ;;  %v250_v18 = vand.u32 4294901760, %v249_v15 }
  0x72   :  { %1061 = vmatprep.subr.bf16.mxu1 %v1241_v0  ;;  %1133 = vmatprep.subr.bf16.mxu0 %v1241_v0 }
  0x73   :  { %v1071_v19 = vpack.c.bf16 %v250_v18, %v243_v17 }
  0x79   :  { %1063 = vmatpush3.bf16.xpose.msra.mxu1 %v1062_v41  ;;  %1135 = vmatpush3.bf16.xpose.msra.mxu0 %v1134_v42 }
  0x7a   :  { %1064 = vmatprep.subr.bf16.mxu1 %v1241_v0  ;;  %1136 = vmatprep.subr.bf16.mxu0 %v1241_v0 }
  0x81   :  { %1066 = vmatpush3.bf16.xpose.msra.mxu1 %v1065_v56  ;;  %1138 = vmatpush3.bf16.xpose.msra.mxu0 %v1137_v58 }
  0x82   :  { %1067 = vmatprep.subr.bf16.mxu1 %v1241_v0  ;;  %1139 = vmatprep.subr.bf16.mxu0 %v1241_v0 }
  0x89   :  { %1069 = vmatpush3.bf16.xpose.msra.mxu1 %v1068_v12  ;;  %1141 = vmatpush3.bf16.xpose.msra.mxu0 %v1140_v13 }
  0x8a   :  { %1070 = vmatprep.subr.bf16.mxu1 %v1241_v0  ;;  %1142 = vmatprep.subr.bf16.mxu0 %v1241_v0 }
  0x91   :  { %1072 = vmatpush3.bf16.xpose.msra.mxu1 %v1071_v19  ;;  %1144 = vmatpush3.bf16.xpose.msra.mxu0 %v1143_v20 }
  0x92   :  { %1073 = vmatprep.subr.bf16.mxu1 %v1241_v0  ;;  %1145 = vmatprep.subr.bf16.mxu0 %v1241_v0 }
  0x98   :  { %883 = vmatmul.mubr.f32.vlgmr.msra.gmra.mrb[0].mxu1 %v1364_v60  ;;  %988 = vmatmul.mubr.f32.vlgmr.msra.gmra.mrb[0].mxu0 %v1364_v60 }
  0x99   :  { %1075 = vmatpush3.bf16.xpose.msra.mxu1 %v1074_v30  ;;  %1147 = vmatpush3.bf16.xpose.msra.mxu0 %v1283_v8 }
  0x9a   :  { %1076 = vmatprep.subr.bf16.mxu1 %v1241_v0  ;;  %1148 = vmatprep.subr.bf16.mxu0 %v1241_v0 }
  0x9b   :  { %917 = vmatprep.mubr.msk.f32.mxu1 %vm1242_vm0, %v1243_v1  ;;  %1022 = vmatprep.mubr.msk.f32.mxu0 %vm1242_vm0, %v1243_v1  ;;  %v48_v1 = vstv %s1512_s2 }
  0xa1   :  { %1078 = vmatpush3.bf16.xpose.msra.mxu1 %v1077_v35  ;;  %1150 = vmatpush3.bf16.xpose.msra.mxu0 %v1289_v11 }
  0xa2   :  { %1079 = vmatprep.subr.bf16.mxu1 %v1241_v0  ;;  %1151 = vmatprep.subr.bf16.mxu0 %v1241_v0 }
  0xa9   :  { %1081 = vmatpush3.bf16.xpose.msra.mxu1 %v1080_v38  ;;  %1153 = vmatpush3.bf16.xpose.msra.mxu0 %v1295_v16 }
  0xaa   :  { %1082 = vmatprep.subr.bf16.mxu1 %v1241_v0  ;;  %1154 = vmatprep.subr.bf16.mxu0 %v1241_v0 }
  0xb1   :  { %1084 = vmatpush3.bf16.xpose.msra.mxu1 %v1083_v39  ;;  %1156 = vmatpush3.bf16.xpose.msra.mxu0 %v1313_v29 }
  0xb2   :  { %1085 = vmatprep.subr.bf16.mxu1 %v1241_v0  ;;  %1157 = vmatprep.subr.bf16.mxu0 %v1241_v0 }
  0xb9   :  { %1087 = vmatpush3.bf16.xpose.msra.mxu1 %v1086_v40  ;;  %1159 = vmatpush3.bf16.xpose.msra.mxu0 %v1337_v43 }
  0xba   :  { %1088 = vmatprep.subr.bf16.mxu1 %v1241_v0  ;;  %1160 = vmatprep.subr.bf16.mxu0 %v1241_v0 }
  0xc1   :  { %1090 = vmatpush3.bf16.xpose.msra.mxu1 %v1089_v48  ;;  %1162 = vmatpush3.bf16.xpose.msra.mxu0 %v1349_v51 }
  0xc2   :  { %1091 = vmatprep.subr.bf16.mxu1 %v1241_v0  ;;  %1163 = vmatprep.subr.bf16.mxu0 %v1241_v0 }
  0xc9   :  { %1093 = vmatpush3.bf16.xpose.msra.mxu1 %v1092_v57  ;;  %1165 = vmatpush3.bf16.xpose.msra.mxu0 %v1366_v61 }
  0xca   :  { %1094 = vmatprep.subr.bf16.mxu1 %v1241_v0  ;;  %1166 = vmatprep.subr.bf16.mxu0 %v1241_v0 }
  0xd1   :  { %1096 = vmatpush3.bf16.xpose.msra.mxu1 %v1095_v7  ;;  %1168 = vmatpush3.bf16.xpose.msra.mxu0 %v1384_v10 }
  0xd8   :  { %918 = vmatmul.mubr.f32.vlgmr.msra.gmra.mrb[0].mxu1 %v1373_v4  ;;  %1023 = vmatmul.mubr.f32.vlgmr.msra.gmra.mrb[0].mxu0 %v1364_v60 }
 0x1ab   :  { %v391_v8 = vpop.f32.mrb[0].mxu1  ;;  %v686_v11 = vpop.f32.mrb[0].mxu0 }
 0x1ac   :  { %v1169_v16 = vadd.f32 %v391_v8, %v48_v1  ;;  %v919_v21 = vpop.f32.mrb[1].mxu1  ;;  %v1024_v22 = vpop.f32.mrb[1].mxu0 }
 0x1ae   :  { %v1170_v0 = vadd.f32 %v1169_v16, %v686_v11 }
 0x1b0   :  { %v712_v25 = vmul.f32 -1.442695, %v1170_v0 }
 0x1b2   :  { %1186 = vpow2.f32 %v712_v25 }
 0x1bc   :  { %v1187_v26 = vpop.eup %1186 }
 0x1bd   :  { %v693_v27 = vadd.f32 1.0, %v1187_v26 }
 0x1bf   :  { %1188 = vrcp.f32 %v693_v27 }
 0x1c9   :  { %v1189_v28 = vpop.eup %1188 }
 0x1ca   :  { %696 = vst [vmem:[#allocation6] sm:$0x1] %v1189_v28 }
 0x1cb   :  { %1223 = shalt.err (!%p1220_p12)
}
 0x1cc   :  { %s1224_s6 = scalar_lea.hbm %s1513_s3, 16 }
 0x1cd   :  { %p1225_p13 = scmp.ne.s32.totalorder %s1513_s3, %s1224_s6  ;;  %p1228_p0 = scmp.lt.u32.totalorder %s1224_s6, %s1513_s3 }
 0x1cf   :  { %p1230_p1 = pnand %p1228_p0, %p1225_p13 }
 0x1d1   :  { %1233 = shalt.err (!%p1230_p1)
}
 0x1d2   :  { %706 = dma.vmem_to_hbm [thread:$0]  %s704_s29, 16, %s1513_s3, [#allocation5]  }
 0x1d3   :  { %1236 = dma.done.wait [#allocation5], 16  }
 0x1d4   :  { %1237 = vsyncadd [#allocation5], 4294967280 }
 0x1d5   :  { %710 = vsyncpa [#allocation4], 1 }
 0x1d6   :  { %711 = vsyncpa [#allocation5], 1 }

</bundles_post_ra>
